<compile_context>
chip_gen: v5e
topology: v5e:2x2
jax: 0.10.0
libtpu: 0.0.40
codegen_flags: <defaults>
</compile_context>

<pallas_src>
import jax
import jax.numpy as jnp
from jax.experimental import pallas as pl
from jax.experimental.pallas import tpu as pltpu


# -----------------------------------------------------------------------------
# Kernel 1: fused conditioning MLP.
#   h     = relu(y @ [W1g | W1b] + [b1g | b1b])        (B, 512)   one MXU pass
#   gamma = h[:, :256] @ W2g + b2g                      (B, C)
#   beta  = h[:, 256:] @ W2b + b2b                      (B, C)
# -----------------------------------------------------------------------------
def _mlp_kernel(y_ref, w1_ref, b1_ref, w2g_ref, b2g_ref, w2b_ref, b2b_ref,
                gamma_ref, beta_ref):
    h = jnp.dot(y_ref[...], w1_ref[...],
                preferred_element_type=jnp.float32) + b1_ref[...]
    h = jnp.maximum(h, 0.0)
    gamma_ref[...] = (jnp.dot(h[:, :256], w2g_ref[...],
                              preferred_element_type=jnp.float32)
                      + b2g_ref[...]).astype(gamma_ref.dtype)
    beta_ref[...] = (jnp.dot(h[:, 256:], w2b_ref[...],
                             preferred_element_type=jnp.float32)
                     + b2b_ref[...]).astype(beta_ref.dtype)


# -----------------------------------------------------------------------------
# Kernel 2: tiled channel-wise affine modulation  out = gamma * x + beta
#   x tile:     (TR, TL)     gamma/beta: (TR, 1) broadcast along lanes
# -----------------------------------------------------------------------------
def _affine_kernel(x_ref, g_ref, b_ref, o_ref):
    o_ref[...] = (g_ref[...] * x_ref[...] + b_ref[...]).astype(o_ref.dtype)


def _device_kind():
    try:
        return jax.devices()[0].device_kind.lower()
    except Exception:
        return ""


def _pick_tiles(bc, hw, kind):
    """Pick (TR, TL): TR multiple of 8 (or full), TL multiple of 128 (or full)."""
    # Rows (sublanes): cap at 256.
    tr = bc if bc <= 256 else 256
    # Lanes: larger tiles on v6e/v7x to amortize the ~0.35 us per-step overhead;
    # 2048 on v5e keeps the double-buffered footprint under its 16 MiB default
    # scoped VMEM (256x2048 f32 in+out, 2 buffers ~ 8.5 MiB).
    lane_target = 4096 if (("v6" in kind) or ("v7" in kind)) else 2048
    tl = hw if hw <= lane_target else lane_target
    # v7x megacore: guarantee >= 2 parallel grid points so both TCs get work.
    if "v7" in kind and pl.cdiv(bc, tr) * pl.cdiv(hw, tl) < 2:
        if tl >= 256 and tl % 256 == 0:
            tl //= 2
        elif tr >= 16 and tr % 16 == 0:
            tr //= 2
    return tr, tl


def pack_params(params):
    """One-time fusion of the two MLP branches.

    Call once at init; the result is what affine_forward consumes.  Only the
    first-layer weights are concatenated (shared matmul); the second-layer
    weights stay separate (no zero-padded block-diagonal)."""
    (w1g, b1g, w2g, b2g, w1b, b1b, w2b, b2b) = params
    w1 = jnp.concatenate([w1g, w1b], axis=1)      # (256, 512)
    b1 = jnp.concatenate([b1g, b1b], axis=1)      # (1, 512)
    return (w1, b1, w2g, b2g, w2b, b2b)


def affine_forward(x, y, packed_params):
    """x: (B, C, H, W), y: (B, 256). packed_params from pack_params()."""
    B, C, H, W = x.shape
    assert y.shape == (B, 256)
    w1, b1, w2g, b2g, w2b, b2b = packed_params

    # --- conditioning MLP: single grid point; all operands fit in VMEM ---
    full = lambda shape: pl.BlockSpec(shape, lambda: tuple(0 for _ in shape))
    gamma, beta = pl.pallas_call(
        _mlp_kernel,
        grid=(),
        in_specs=[full(y.shape), full(w1.shape), full(b1.shape),
                  full(w2g.shape), full(b2g.shape),
                  full(w2b.shape), full(b2b.shape)],
        out_specs=(full((B, C)), full((B, C))),
        out_shape=(jax.ShapeDtypeStruct((B, C), jnp.float32),
                   jax.ShapeDtypeStruct((B, C), jnp.float32)),
    )(y, w1, b1, w2g, b2g, w2b, b2b)

    # --- affine modulation over (B*C, H*W), tiled + pipelined ---
    BC, HW = B * C, H * W
    xf = x.reshape(BC, HW)
    gf = gamma.reshape(BC, 1)
    bf = beta.reshape(BC, 1)

    TR, TL = _pick_tiles(BC, HW, _device_kind())
    grid = (pl.cdiv(BC, TR), pl.cdiv(HW, TL))     # lane axis last

    out = pl.pallas_call(
        _affine_kernel,
        grid=grid,
        in_specs=[
            pl.BlockSpec((TR, TL), lambda i, j: (i, j)),
            pl.BlockSpec((TR, 1), lambda i, j: (i, 0)),
            pl.BlockSpec((TR, 1), lambda i, j: (i, 0)),
        ],
        out_specs=pl.BlockSpec((TR, TL), lambda i, j: (i, j)),
        out_shape=jax.ShapeDtypeStruct((BC, HW), x.dtype),
        compiler_params=pltpu.CompilerParams(
            dimension_semantics=("parallel", "parallel")),
    )(xf, gf, bf)

    return out.reshape(B, C, H, W)


def init_params(key, num_features):
    """Deterministic init mirroring the PyTorch module's __init__/_initialize.

    linear1 of both branches: uniform(-1/sqrt(256), 1/sqrt(256)) (PyTorch default).
    linear2 of fc_gamma: weight = 0, bias = 1.
    linear2 of fc_beta:  weight = 0, bias = 0.
    Weights stored transposed: (in_features, out_features)."""
    k1, k2, k3, k4 = jax.random.split(key, 4)
    bound = 1.0 / jnp.sqrt(256.0)
    w1g = jax.random.uniform(k1, (256, 256), jnp.float32, -bound, bound)
    b1g = jax.random.uniform(k2, (1, 256), jnp.float32, -bound, bound)
    w1b = jax.random.uniform(k3, (256, 256), jnp.float32, -bound, bound)
    b1b = jax.random.uniform(k4, (1, 256), jnp.float32, -bound, bound)

    w2g = jnp.zeros((256, num_features), jnp.float32)
    b2g = jnp.ones((1, num_features), jnp.float32)
    w2b = jnp.zeros((256, num_features), jnp.float32)
    b2b = jnp.zeros((1, num_features), jnp.float32)

    return (w1g, b1g, w2g, b2g, w1b, b1b, w2b, b2b)


def reference_forward(x, y, params):
    """Pure-JAX reference of the PyTorch forward pass."""
    (w1g, b1g, w2g, b2g, w1b, b1b, w2b, b2b) = params
    gamma = jnp.maximum(y @ w1g + b1g, 0.0) @ w2g + b2g
    beta = jnp.maximum(y @ w1b + b1b, 0.0) @ w2b + b2b
    gamma = gamma[:, :, None, None]
    beta = beta[:, :, None, None]
    return gamma * x + beta


if __name__ == "__main__":
    key = jax.random.PRNGKey(0)
    kx, ky, kp = jax.random.split(key, 3)

    B, C, H, W = 2, 4, 16, 16          # num_features = C = 4
    x = jax.random.normal(kx, (B, C, H, W), jnp.float32)
    y = jax.random.normal(ky, (B, 256), jnp.float32)

    params = init_params(kp, C)
    packed = pack_params(params)       # one-time fusion (not per forward call)

    out = affine_forward(x, y, packed)
    out = jax.block_until_ready(out)

    ref = reference_forward(x, y, params)
    assert out.shape == (B, C, H, W)
    assert jnp.allclose(out, ref, atol=1e-5, rtol=1e-5)

    print("KERNEL_OK")
</pallas_src>

<mosaic_0001>
module attributes {stable_mosaic.version = 11 : i64} {
  func.func @_mlp_kernel(%arg0: memref<2x256xf32, #tpu.memory_space<vmem>>, %arg1: memref<256x512xf32, #tpu.memory_space<vmem>>, %arg2: memref<1x512xf32, #tpu.memory_space<vmem>>, %arg3: memref<256x4xf32, #tpu.memory_space<vmem>>, %arg4: memref<1x4xf32, #tpu.memory_space<vmem>>, %arg5: memref<256x4xf32, #tpu.memory_space<vmem>>, %arg6: memref<1x4xf32, #tpu.memory_space<vmem>>, %arg7: memref<2x4xf32, #tpu.memory_space<vmem>>, %arg8: memref<2x4xf32, #tpu.memory_space<vmem>>) attributes {dimension_semantics = [], scalar_prefetch = 0 : i64, scratch_operands = 0 : i64, tpu.core_type = #tpu.core_type<tc>} {
    %c0 = arith.constant 0 : index
    %c0_0 = arith.constant 0 : index
    %0 = vector.load %arg0[%c0, %c0_0] : memref<2x256xf32, #tpu.memory_space<vmem>>, vector<2x256xf32>
    %c0_1 = arith.constant 0 : index
    %c0_2 = arith.constant 0 : index
    %1 = vector.load %arg1[%c0_1, %c0_2] : memref<256x512xf32, #tpu.memory_space<vmem>>, vector<256x512xf32>
    %cst = arith.constant dense<0.000000e+00> : vector<2x512xf32>
    %2 = tpu.matmul %0, %1, %cst {dimension_numbers = #tpu.dot_dimension_numbers<[1], [0], [0], [1], [0, 0, 1, 1], [], []>} : vector<2x256xf32>, vector<256x512xf32>, vector<2x512xf32> -> vector<2x512xf32>
    %c0_3 = arith.constant 0 : index
    %c0_4 = arith.constant 0 : index
    %3 = vector.load %arg2[%c0_3, %c0_4] : memref<1x512xf32, #tpu.memory_space<vmem>>, vector<1x512xf32>
    %4 = vector.broadcast %3 : vector<1x512xf32> to vector<2x512xf32>
    %5 = arith.addf %2, %4 : vector<2x512xf32>
    %cst_5 = arith.constant 0.000000e+00 : f32
    %6 = vector.broadcast %cst_5 : f32 to vector<2x512xf32>
    %7 = arith.maximumf %5, %6 : vector<2x512xf32>
    %8 = vector.extract_strided_slice %7 {offsets = [0, 0], sizes = [2, 256], strides = [1, 1]} : vector<2x512xf32> to vector<2x256xf32>
    %c0_6 = arith.constant 0 : index
    %c0_7 = arith.constant 0 : index
    %9 = vector.load %arg3[%c0_6, %c0_7] : memref<256x4xf32, #tpu.memory_space<vmem>>, vector<256x4xf32>
    %cst_8 = arith.constant dense<0.000000e+00> : vector<2x4xf32>
    %10 = tpu.matmul %8, %9, %cst_8 {dimension_numbers = #tpu.dot_dimension_numbers<[1], [0], [0], [1], [0, 0, 1, 1], [], []>} : vector<2x256xf32>, vector<256x4xf32>, vector<2x4xf32> -> vector<2x4xf32>
    %c0_9 = arith.constant 0 : index
    %c0_10 = arith.constant 0 : index
    %11 = vector.load %arg4[%c0_9, %c0_10] : memref<1x4xf32, #tpu.memory_space<vmem>>, vector<1x4xf32>
    %12 = vector.broadcast %11 : vector<1x4xf32> to vector<2x4xf32>
    %13 = arith.addf %10, %12 : vector<2x4xf32>
    %c0_11 = arith.constant 0 : index
    %c0_12 = arith.constant 0 : index
    %14 = vector.load %arg7[%c0_11, %c0_12] : memref<2x4xf32, #tpu.memory_space<vmem>>, vector<2x4xf32>
    tpu.vector_store %arg7[%c0_11, %c0_12], %13 {strides = array<i32>} : memref<2x4xf32, #tpu.memory_space<vmem>>, vector<2x4xf32>,
    %15 = vector.extract_strided_slice %7 {offsets = [0, 256], sizes = [2, 256], strides = [1, 1]} : vector<2x512xf32> to vector<2x256xf32>
    %c0_13 = arith.constant 0 : index
    %c0_14 = arith.constant 0 : index
    %16 = vector.load %arg5[%c0_13, %c0_14] : memref<256x4xf32, #tpu.memory_space<vmem>>, vector<256x4xf32>
    %cst_15 = arith.constant dense<0.000000e+00> : vector<2x4xf32>
    %17 = tpu.matmul %15, %16, %cst_15 {dimension_numbers = #tpu.dot_dimension_numbers<[1], [0], [0], [1], [0, 0, 1, 1], [], []>} : vector<2x256xf32>, vector<256x4xf32>, vector<2x4xf32> -> vector<2x4xf32>
    %c0_16 = arith.constant 0 : index
    %c0_17 = arith.constant 0 : index
    %18 = vector.load %arg6[%c0_16, %c0_17] : memref<1x4xf32, #tpu.memory_space<vmem>>, vector<1x4xf32>
    %19 = vector.broadcast %18 : vector<1x4xf32> to vector<2x4xf32>
    %20 = arith.addf %17, %19 : vector<2x4xf32>
    %c0_18 = arith.constant 0 : index
    %c0_19 = arith.constant 0 : index
    %21 = vector.load %arg8[%c0_18, %c0_19] : memref<2x4xf32, #tpu.memory_space<vmem>>, vector<2x4xf32>
    tpu.vector_store %arg8[%c0_18, %c0_19], %20 {strides = array<i32>} : memref<2x4xf32, #tpu.memory_space<vmem>>, vector<2x4xf32>,
    return
  }
}

</mosaic_0001>

<bundles_post_ra>
// kernel: tpu_custom_call.1
= control target key start
LH: loop header
LB: loop body
LE: loop exit
PB: predicated region body
PF: predicated region fallthrough
CT: control target
= control target key end

     0   :  { %14 = vsyncpa [#allocation3], 0  ;;  %s893_s0 = inlined_call_operand.vmem [shape: f32[2,256], index: 0, kind: input, shape index: {}]   ;;  %s894_s1 = inlined_call_operand.hbm [shape: f32[256,512], index: 1, kind: input, shape index: {}]   ;;  %s895_s2 = inlined_call_operand.vmem [shape: f32[1,512], index: 2, kind: input, shape index: {}]   ;;  %s896_s3 = inlined_call_operand.vmem [shape: f32[256,4], index: 3, kind: input, shape index: {}]   ;;  %s897_s4 = inlined_call_operand.vmem [shape: f32[1,4], index: 4, kind: input, shape index: {}]   ;;  %s898_s5 = inlined_call_operand.vmem [shape: f32[256,4], index: 5, kind: input, shape index: {}]   ;;  %s899_s6 = inlined_call_operand.vmem [shape: f32[1,4], index: 6, kind: input, shape index: {}]   ;;  %s900_s7 = inlined_call_operand.hbm [shape: f32[2,4], index: 7, kind: output, shape index: {0}]   ;;  %s901_s8 = inlined_call_operand.hbm [shape: f32[2,4], index: 8, kind: output, shape index: {1}]  }
   0x1   :  { %15 = vsyncpa [#allocation4], 0 }
   0x2   :  { %16 = vsyncpa [#allocation7], 0  ;;  %s23_s29 = sshll.u32 %s894_s1, 4  ;;  %s628_s30 = smov [#allocation2]   ;;  %s24_s29 = int_to_ptr.hbm [resolvable:$true] %s23_s29 }
   0x3   :  { %s25_s9 = sshll.u32 %s628_s30, 4  ;;  %s629_s10 = smov 512   ;;  %s26_s9 = int_to_ptr.vmem [resolvable:$true] %s25_s9 }
   0x4   :  { %s630_s11 = smov 32  }
   0x5   :  { %31 = dma.hbm_to_vmem [thread:$0]  %s24_s29, 16384, %s26_s9, [#allocation3], %s629_s10, %s629_s10, %s630_s11  }
   0x6   :  { %622 = dma.done.wait [#allocation3], 16384  }
   0x7   :  { %623 = vsyncadd [#allocation3], 4294950912  ;;  %v108_v0 = vld [vmem:[#allocation2 + $0x1e8] sm:$0xff]  ;;  %v107_v3 = vld [vmem:[#allocation2 + $0x1e0] sm:$0xff]  ;;  %s631_s21 = smov [#allocation5]   ;;  %s517_s25 = sshll.u32 %s900_s7, 4  ;;  %s518_s25 = int_to_ptr.hbm [resolvable:$true] %s517_s25 }
   0x8   :  { %v104_v1 = vld [vmem:[#allocation2 + $0x1c8] sm:$0xff]  ;;  %231 = vmatpush.msra.mxu2 %v108_v0  ;;  %191 = vmatpush.msra.mxu0 %v107_v3  ;;  %v103_v6 = vld [vmem:[#allocation2 + $0x1c0] sm:$0xff]  ;;  %v110_v61 = vld [vmem:[#allocation2 + $0x1f8] sm:$0xff]  ;;  %s515_s22 = sshll.u32 %s631_s21, 4  ;;  %vm431_vm0 = vcmask 25600   ;;  %s528_s7 = sshll.u32 %s901_s8, 4  ;;  %s516_s22 = int_to_ptr.vmem [resolvable:$true] %s515_s22  ;;  %s529_s7 = int_to_ptr.hbm [resolvable:$true] %s528_s7 }
   0x9   :  { %v172_v2 = vld [vmem:[#allocation2 + $0x3e8] sm:$0xff]  ;;  %v171_v7 = vld [vmem:[#allocation2 + $0x3e0] sm:$0xff]  ;;  %v174_v62 = vld [vmem:[#allocation2 + $0x3f8] sm:$0xff] }
   0xa   :  { %251 = vmatpush.msra.mxu3 %v172_v2  ;;  %v168_v4 = vld [vmem:[#allocation2 + $0x3c8] sm:$0xff]  ;;  %232 = vmatpush.msra.mxu2 %v104_v1  ;;  %v99_v9 = vld [vmem:[#allocation2 + $0x1a0] sm:$0xff]  ;;  %v106_v1 = vld [vmem:[#allocation2 + $0x1d8] sm:$0xff] }
   0xb   :  { %v100_v5 = vld [vmem:[#allocation2 + $0x1a8] sm:$0xff]  ;;  %v167_v10 = vld [vmem:[#allocation2 + $0x3c0] sm:$0xff]  ;;  %192 = vmatpush.msra.mxu0 %v103_v6  ;;  %211 = vmatpush.msra.mxu1 %v171_v7  ;;  %v109_v2 = vld [vmem:[#allocation2 + $0x1f0] sm:$0xff] }
   0xc   :  { %252 = vmatpush.msra.mxu3 %v168_v4  ;;  %v164_v8 = vld [vmem:[#allocation2 + $0x3a8] sm:$0xff]  ;;  %233 = vmatpush.msra.mxu2 %v100_v5  ;;  %v95_v13 = vld [vmem:[#allocation2 + $0x180] sm:$0xff]  ;;  %v170_v3 = vld [vmem:[#allocation2 + $0x3d8] sm:$0xff] }
   0xd   :  { %v96_v11 = vld [vmem:[#allocation2 + $0x188] sm:$0xff]  ;;  %v163_v14 = vld [vmem:[#allocation2 + $0x3a0] sm:$0xff]  ;;  %193 = vmatpush.msra.mxu0 %v99_v9  ;;  %212 = vmatpush.msra.mxu1 %v167_v10  ;;  %v102_v5 = vld [vmem:[#allocation2 + $0x1b8] sm:$0xff] }
   0xe   :  { %v160_v12 = vld [vmem:[#allocation2 + $0x388] sm:$0xff]  ;;  %253 = vmatpush.msra.mxu3 %v164_v8  ;;  %234 = vmatpush.msra.mxu2 %v96_v11  ;;  %v91_v17 = vld [vmem:[#allocation2 + $0x160] sm:$0xff]  ;;  %v105_v6 = vld [vmem:[#allocation2 + $0x1d0] sm:$0xff] }
   0xf   :  { %v92_v15 = vld [vmem:[#allocation2 + $0x168] sm:$0xff]  ;;  %v159_v18 = vld [vmem:[#allocation2 + $0x380] sm:$0xff]  ;;  %194 = vmatpush.msra.mxu0 %v95_v13  ;;  %213 = vmatpush.msra.mxu1 %v163_v14  ;;  %v173_v7 = vld [vmem:[#allocation2 + $0x3f0] sm:$0xff] }
  0x10   :  { %v156_v16 = vld [vmem:[#allocation2 + $0x368] sm:$0xff]  ;;  %254 = vmatpush.msra.mxu3 %v160_v12  ;;  %235 = vmatpush.msra.mxu2 %v92_v15  ;;  %v87_v21 = vld [vmem:[#allocation2 + $0x140] sm:$0xff]  ;;  %v166_v8 = vld [vmem:[#allocation2 + $0x3b8] sm:$0xff] }
  0x11   :  { %v88_v19 = vld [vmem:[#allocation2 + $0x148] sm:$0xff]  ;;  %v155_v22 = vld [vmem:[#allocation2 + $0x360] sm:$0xff]  ;;  %195 = vmatpush.msra.mxu0 %v91_v17  ;;  %214 = vmatpush.msra.mxu1 %v159_v18  ;;  %v98_v9 = vld [vmem:[#allocation2 + $0x198] sm:$0xff] }
  0x12   :  { %v152_v20 = vld [vmem:[#allocation2 + $0x348] sm:$0xff]  ;;  %255 = vmatpush.msra.mxu3 %v156_v16  ;;  %236 = vmatpush.msra.mxu2 %v88_v19  ;;  %v83_v25 = vld [vmem:[#allocation2 + $0x120] sm:$0xff]  ;;  %v101_v10 = vld [vmem:[#allocation2 + $0x1b0] sm:$0xff] }
  0x13   :  { %v84_v23 = vld [vmem:[#allocation2 + $0x128] sm:$0xff]  ;;  %v151_v26 = vld [vmem:[#allocation2 + $0x340] sm:$0xff]  ;;  %196 = vmatpush.msra.mxu0 %v87_v21  ;;  %215 = vmatpush.msra.mxu1 %v155_v22  ;;  %v46_v11 = vld [vmem:[%s893_s0] sm:$0xf] }
  0x14   :  { %v148_v24 = vld [vmem:[#allocation2 + $0x328] sm:$0xff]  ;;  %256 = vmatpush.msra.mxu3 %v152_v20  ;;  %237 = vmatpush.msra.mxu2 %v84_v23  ;;  %v79_v29 = vld [vmem:[#allocation2 + $0x100] sm:$0xff]  ;;  %v169_v12 = vld [vmem:[#allocation2 + $0x3d0] sm:$0xff]  ;;  %186 = vst [vmem:[#allocation1] ss:$4 sm:$0xff] %v46_v11 }
  0x15   :  { %v80_v27 = vld [vmem:[#allocation2 + $0x108] sm:$0xff]  ;;  %v147_v30 = vld [vmem:[#allocation2 + $0x320] sm:$0xff]  ;;  %197 = vmatpush.msra.mxu0 %v83_v25  ;;  %216 = vmatpush.msra.mxu1 %v151_v26  ;;  %v162_v13 = vld [vmem:[#allocation2 + $0x398] sm:$0xff] }
  0x16   :  { %v144_v28 = vld [vmem:[#allocation2 + $0x308] sm:$0xff]  ;;  %257 = vmatpush.msra.mxu3 %v148_v24  ;;  %238 = vmatpush.msra.mxu2 %v80_v27  ;;  %v75_v33 = vld [vmem:[#allocation2 + $0xe0] sm:$0xff]  ;;  %v94_v14 = vld [vmem:[#allocation2 + $0x178] sm:$0xff] }
  0x17   :  { %v76_v31 = vld [vmem:[#allocation2 + $0xe8] sm:$0xff]  ;;  %v143_v34 = vld [vmem:[#allocation2 + $0x300] sm:$0xff]  ;;  %198 = vmatpush.msra.mxu0 %v79_v29  ;;  %217 = vmatpush.msra.mxu1 %v147_v30  ;;  %v97_v15 = vld [vmem:[#allocation2 + $0x190] sm:$0xff] }
  0x18   :  { %v140_v32 = vld [vmem:[#allocation2 + $0x2e8] sm:$0xff]  ;;  %258 = vmatpush.msra.mxu3 %v144_v28  ;;  %239 = vmatpush.msra.mxu2 %v76_v31  ;;  %v71_v37 = vld [vmem:[#allocation2 + $0xc0] sm:$0xff]  ;;  %v165_v16 = vld [vmem:[#allocation2 + $0x3b0] sm:$0xff] }
  0x19   :  { %v72_v35 = vld [vmem:[#allocation2 + $0xc8] sm:$0xff]  ;;  %v139_v38 = vld [vmem:[#allocation2 + $0x2e0] sm:$0xff]  ;;  %199 = vmatpush.msra.mxu0 %v75_v33  ;;  %218 = vmatpush.msra.mxu1 %v143_v34  ;;  %v158_v17 = vld [vmem:[#allocation2 + $0x378] sm:$0xff] }
  0x1a   :  { %v136_v36 = vld [vmem:[#allocation2 + $0x2c8] sm:$0xff]  ;;  %259 = vmatpush.msra.mxu3 %v140_v32  ;;  %240 = vmatpush.msra.mxu2 %v72_v35  ;;  %v67_v41 = vld [vmem:[#allocation2 + $0xa0] sm:$0xff]  ;;  %v90_v18 = vld [vmem:[#allocation2 + $0x158] sm:$0xff] }
  0x1b   :  { %v68_v39 = vld [vmem:[#allocation2 + $0xa8] sm:$0xff]  ;;  %v135_v42 = vld [vmem:[#allocation2 + $0x2c0] sm:$0xff]  ;;  %200 = vmatpush.msra.mxu0 %v71_v37  ;;  %219 = vmatpush.msra.mxu1 %v139_v38  ;;  %v93_v19 = vld [vmem:[#allocation2 + $0x170] sm:$0xff] }
  0x1c   :  { %v132_v40 = vld [vmem:[#allocation2 + $0x2a8] sm:$0xff]  ;;  %260 = vmatpush.msra.mxu3 %v136_v36  ;;  %241 = vmatpush.msra.mxu2 %v68_v39  ;;  %v63_v45 = vld [vmem:[#allocation2 + $0x80] sm:$0xff]  ;;  %v161_v20 = vld [vmem:[#allocation2 + $0x390] sm:$0xff] }
  0x1d   :  { %v64_v43 = vld [vmem:[#allocation2 + $0x88] sm:$0xff]  ;;  %v131_v46 = vld [vmem:[#allocation2 + $0x2a0] sm:$0xff]  ;;  %201 = vmatpush.msra.mxu0 %v67_v41  ;;  %220 = vmatpush.msra.mxu1 %v135_v42  ;;  %v154_v21 = vld [vmem:[#allocation2 + $0x358] sm:$0xff] }
  0x1e   :  { %v128_v44 = vld [vmem:[#allocation2 + $0x288] sm:$0xff]  ;;  %261 = vmatpush.msra.mxu3 %v132_v40  ;;  %242 = vmatpush.msra.mxu2 %v64_v43  ;;  %v59_v49 = vld [vmem:[#allocation2 + $0x60] sm:$0xff]  ;;  %v86_v22 = vld [vmem:[#allocation2 + $0x138] sm:$0xff] }
  0x1f   :  { %v60_v47 = vld [vmem:[#allocation2 + $0x68] sm:$0xff]  ;;  %v127_v50 = vld [vmem:[#allocation2 + $0x280] sm:$0xff]  ;;  %202 = vmatpush.msra.mxu0 %v63_v45  ;;  %221 = vmatpush.msra.mxu1 %v131_v46  ;;  %v89_v23 = vld [vmem:[#allocation2 + $0x150] sm:$0xff] }
  0x20   :  { %v124_v48 = vld [vmem:[#allocation2 + $0x268] sm:$0xff]  ;;  %262 = vmatpush.msra.mxu3 %v128_v44  ;;  %243 = vmatpush.msra.mxu2 %v60_v47  ;;  %v55_v53 = vld [vmem:[#allocation2 + $0x40] sm:$0xff]  ;;  %v157_v24 = vld [vmem:[#allocation2 + $0x370] sm:$0xff] }
  0x21   :  { %v56_v51 = vld [vmem:[#allocation2 + $0x48] sm:$0xff]  ;;  %v123_v54 = vld [vmem:[#allocation2 + $0x260] sm:$0xff]  ;;  %203 = vmatpush.msra.mxu0 %v59_v49  ;;  %222 = vmatpush.msra.mxu1 %v127_v50  ;;  %v150_v25 = vld [vmem:[#allocation2 + $0x338] sm:$0xff] }
  0x22   :  { %v120_v52 = vld [vmem:[#allocation2 + $0x248] sm:$0xff]  ;;  %263 = vmatpush.msra.mxu3 %v124_v48  ;;  %244 = vmatpush.msra.mxu2 %v56_v51  ;;  %v51_v57 = vld [vmem:[#allocation2 + $0x20] sm:$0xff]  ;;  %v82_v26 = vld [vmem:[#allocation2 + $0x118] sm:$0xff] }
  0x23   :  { %v52_v55 = vld [vmem:[#allocation2 + $0x28] sm:$0xff]  ;;  %v119_v58 = vld [vmem:[#allocation2 + $0x240] sm:$0xff]  ;;  %204 = vmatpush.msra.mxu0 %v55_v53  ;;  %223 = vmatpush.msra.mxu1 %v123_v54  ;;  %v85_v27 = vld [vmem:[#allocation2 + $0x130] sm:$0xff] }
  0x24   :  { %v116_v56 = vld [vmem:[#allocation2 + $0x228] sm:$0xff]  ;;  %264 = vmatpush.msra.mxu3 %v120_v52  ;;  %245 = vmatpush.msra.mxu2 %v52_v55  ;;  %v47_v63 = vld [vmem:[#allocation2] sm:$0xff]  ;;  %v153_v28 = vld [vmem:[#allocation2 + $0x350] sm:$0xff] }
  0x25   :  { %v48_v59 = vld [vmem:[#allocation2 + $0x8] sm:$0xff]  ;;  %205 = vmatpush.msra.mxu0 %v51_v57  ;;  %224 = vmatpush.msra.mxu1 %v119_v58  ;;  %v115_v0 = vld [vmem:[#allocation2 + $0x220] sm:$0xff]  ;;  %v146_v29 = vld [vmem:[#allocation2 + $0x318] sm:$0xff] }
  0x26   :  { %v112_v60 = vld [vmem:[#allocation2 + $0x208] sm:$0xff]  ;;  %265 = vmatpush.msra.mxu3 %v116_v56  ;;  %246 = vmatpush.msra.mxu2 %v48_v59  ;;  %v111_v4 = vld [vmem:[#allocation2 + $0x200] sm:$0xff]  ;;  %v78_v30 = vld [vmem:[#allocation2 + $0xf8] sm:$0xff] }
  0x27   :  { %206 = vmatpush.msra.mxu0 %v47_v63  ;;  %225 = vmatpush.msra.mxu1 %v115_v0  ;;  %v81_v31 = vld [vmem:[#allocation2 + $0x110] sm:$0xff]  ;;  %v142_v33 = vld [vmem:[#allocation2 + $0x2f8] sm:$0xff]  ;;  %v188_v48 = vld.sshfl [vmem:[#allocation1 + $0x8] sm:$0xff pattern:$0x73625140] }
  0x28   :  { %266 = vmatpush.msra.mxu3 %v112_v60  ;;  %311 = vmatpush.msrb.mxu2 %v110_v61  ;;  %v149_v32 = vld [vmem:[#allocation2 + $0x330] sm:$0xff]  ;;  %v74_v34 = vld [vmem:[#allocation2 + $0xd8] sm:$0xff]  ;;  %v463_v11 = vld [vmem:[%s898_s5 + $0xf0] sm:$0xff] }
  0x29   :  { %271 = vmatpush.msrb.mxu0 %v109_v2  ;;  %226 = vmatpush.msra.mxu1 %v111_v4  ;;  %v77_v35 = vld [vmem:[#allocation2 + $0xf0] sm:$0xff]  ;;  %v70_v37 = vld [vmem:[#allocation2 + $0xb8] sm:$0xff]  ;;  %v447_v4 = vld [vmem:[%s898_s5 + $0x70] sm:$0xff] }
  0x2a   :  { %331 = vmatpush.msrb.mxu3 %v174_v62  ;;  %312 = vmatpush.msrb.mxu2 %v106_v1  ;;  %v145_v36 = vld [vmem:[#allocation2 + $0x310] sm:$0xff]  ;;  %v138_v38 = vld [vmem:[#allocation2 + $0x2d8] sm:$0xff] }
  0x2b   :  { %272 = vmatpush.msrb.mxu0 %v105_v6  ;;  %291 = vmatpush.msrb.mxu1 %v173_v7  ;;  %v73_v39 = vld [vmem:[#allocation2 + $0xd0] sm:$0xff]  ;;  %v134_v41 = vld [vmem:[#allocation2 + $0x2b8] sm:$0xff]  ;;  %v369_v7 = vld [vmem:[%s896_s3 + $0x70] sm:$0xff] }
  0x2c   :  { %332 = vmatpush.msrb.mxu3 %v170_v3  ;;  %313 = vmatpush.msrb.mxu2 %v102_v5  ;;  %v141_v40 = vld [vmem:[#allocation2 + $0x2f0] sm:$0xff]  ;;  %v66_v42 = vld [vmem:[#allocation2 + $0x98] sm:$0xff] }
  0x2d   :  { %273 = vmatpush.msrb.mxu0 %v101_v10  ;;  %292 = vmatpush.msrb.mxu1 %v169_v12  ;;  %v69_v43 = vld [vmem:[#allocation2 + $0xb0] sm:$0xff]  ;;  %v187_v44 = vld.sshfl [vmem:[#allocation1] sm:$0xff pattern:$0x73625140]  ;;  %v368_v10 = vld [vmem:[%s896_s3 + $0x68] sm:$0xff] }
  0x2e   :  { %333 = vmatpush.msrb.mxu3 %v166_v8  ;;  %314 = vmatpush.msrb.mxu2 %v98_v9  ;;  %v137_v45 = vld [vmem:[#allocation2 + $0x2d0] sm:$0xff]  ;;  %v62_v46 = vld [vmem:[#allocation2 + $0x78] sm:$0xff]  ;;  %v446_v9 = vld [vmem:[%s898_s5 + $0x68] sm:$0xff] }
  0x2f   :  { %274 = vmatpush.msrb.mxu0 %v97_v15  ;;  %293 = vmatpush.msrb.mxu1 %v165_v16  ;;  %v130_v47 = vld [vmem:[#allocation2 + $0x298] sm:$0xff]  ;;  %v65_v49 = vld [vmem:[#allocation2 + $0x90] sm:$0xff]  ;;  %v385_v12 = vld [vmem:[%s896_s3 + $0xf0] sm:$0xff] }
  0x30   :  { %334 = vmatpush.msrb.mxu3 %v162_v13  ;;  %315 = vmatpush.msrb.mxu2 %v94_v14  ;;  %v133_v50 = vld [vmem:[#allocation2 + $0x2b0] sm:$0xff]  ;;  %v58_v51 = vld [vmem:[#allocation2 + $0x58] sm:$0xff]  ;;  %v462_v15 = vld [vmem:[%s898_s5 + $0xe8] sm:$0xff] }
  0x31   :  { %275 = vmatpush.msrb.mxu0 %v93_v19  ;;  %294 = vmatpush.msrb.mxu1 %v161_v20  ;;  %v126_v52 = vld [vmem:[#allocation2 + $0x278] sm:$0xff]  ;;  %v61_v53 = vld [vmem:[#allocation2 + $0x70] sm:$0xff]  ;;  %v384_v16 = vld [vmem:[%s896_s3 + $0xe8] sm:$0xff] }
  0x32   :  { %335 = vmatpush.msrb.mxu3 %v158_v17  ;;  %316 = vmatpush.msrb.mxu2 %v90_v18  ;;  %v129_v54 = vld [vmem:[#allocation2 + $0x290] sm:$0xff]  ;;  %v54_v55 = vld [vmem:[#allocation2 + $0x38] sm:$0xff] }
  0x33   :  { %276 = vmatpush.msrb.mxu0 %v89_v23  ;;  %295 = vmatpush.msrb.mxu1 %v157_v24  ;;  %v122_v56 = vld [vmem:[#allocation2 + $0x258] sm:$0xff]  ;;  %v57_v57 = vld [vmem:[#allocation2 + $0x50] sm:$0xff] }
  0x34   :  { %336 = vmatpush.msrb.mxu3 %v154_v21  ;;  %317 = vmatpush.msrb.mxu2 %v86_v22  ;;  %v125_v58 = vld [vmem:[#allocation2 + $0x270] sm:$0xff]  ;;  %v50_v59 = vld [vmem:[#allocation2 + $0x18] sm:$0xff]  ;;  %v443_v21 = vld [vmem:[%s898_s5 + $0x50] sm:$0xff] }
  0x35   :  { %277 = vmatpush.msrb.mxu0 %v85_v27  ;;  %296 = vmatpush.msrb.mxu1 %v153_v28  ;;  %v118_v60 = vld [vmem:[#allocation2 + $0x238] sm:$0xff]  ;;  %v53_v61 = vld [vmem:[#allocation2 + $0x30] sm:$0xff]  ;;  %v365_v22 = vld [vmem:[%s896_s3 + $0x50] sm:$0xff] }
  0x36   :  { %337 = vmatpush.msrb.mxu3 %v150_v25  ;;  %318 = vmatpush.msrb.mxu2 %v82_v26  ;;  %v121_v62 = vld [vmem:[#allocation2 + $0x250] sm:$0xff]  ;;  %v114_v63 = vld [vmem:[#allocation2 + $0x218] sm:$0xff]  ;;  %v442_v25 = vld [vmem:[%s898_s5 + $0x48] sm:$0xff] }
  0x37   :  { %278 = vmatpush.msrb.mxu0 %v81_v31  ;;  %297 = vmatpush.msrb.mxu1 %v149_v32  ;;  %v448_v0 = vld [vmem:[%s898_s5 + $0x78] sm:$0xff]  ;;  %v445_v13 = vld [vmem:[%s898_s5 + $0x60] sm:$0xff]  ;;  %v364_v26 = vld [vmem:[%s896_s3 + $0x48] sm:$0xff] }
  0x38   :  { %338 = vmatpush.msrb.mxu3 %v146_v29  ;;  %319 = vmatpush.msrb.mxu2 %v78_v30  ;;  %v49_v1 = vld [vmem:[#allocation2 + $0x10] sm:$0xff]  ;;  %v367_v14 = vld [vmem:[%s896_s3 + $0x60] sm:$0xff]  ;;  %v459_v27 = vld [vmem:[%s898_s5 + $0xd0] sm:$0xff] }
  0x39   :  { %279 = vmatpush.msrb.mxu0 %v77_v35  ;;  %298 = vmatpush.msrb.mxu1 %v145_v36  ;;  %v117_v2 = vld [vmem:[#allocation2 + $0x230] sm:$0xff]  ;;  %v461_v19 = vld [vmem:[%s898_s5 + $0xe0] sm:$0xff]  ;;  %v381_v28 = vld [vmem:[%s896_s3 + $0xd0] sm:$0xff] }
  0x3a   :  { %339 = vmatpush.msrb.mxu3 %v142_v33  ;;  %320 = vmatpush.msrb.mxu2 %v74_v34  ;;  %v370_v3 = vld [vmem:[%s896_s3 + $0x78] sm:$0xff]  ;;  %v383_v20 = vld [vmem:[%s896_s3 + $0xe0] sm:$0xff]  ;;  %v458_v31 = vld [vmem:[%s898_s5 + $0xc8] sm:$0xff] }
  0x3b   :  { %280 = vmatpush.msrb.mxu0 %v73_v39  ;;  %299 = vmatpush.msrb.mxu1 %v141_v40  ;;  %v113_v5 = vld [vmem:[#allocation2 + $0x210] sm:$0xff]  ;;  %v441_v29 = vld [vmem:[%s898_s5 + $0x40] sm:$0xff]  ;;  %v380_v32 = vld [vmem:[%s896_s3 + $0xc8] sm:$0xff] }
  0x3c   :  { %340 = vmatpush.msrb.mxu3 %v138_v38  ;;  %321 = vmatpush.msrb.mxu2 %v70_v37  ;;  %v464_v6 = vld [vmem:[%s898_s5 + $0xf8] sm:$0xff]  ;;  %v363_v30 = vld [vmem:[%s896_s3 + $0x40] sm:$0xff]  ;;  %v361_v35 = vld [vmem:[%s896_s3 + $0x30] sm:$0xff] }
  0x3d   :  { %281 = vmatpush.msrb.mxu0 %v69_v43  ;;  %247 = vmatmul.f32.vlgmr.msra.gmra.mxu2 %v187_v44  ;;  %v386_v8 = vld [vmem:[%s896_s3 + $0xf8] sm:$0xff]  ;;  %v379_v34 = vld [vmem:[%s896_s3 + $0xc0] sm:$0xff]  ;;  %v360_v37 = vld [vmem:[%s896_s3 + $0x28] sm:$0xff] }
  0x3e   :  { %341 = vmatpush.msrb.mxu3 %v134_v41  ;;  %322 = vmatpush.msrb.mxu2 %v66_v42  ;;  %v444_v17 = vld [vmem:[%s898_s5 + $0x58] sm:$0xff]  ;;  %v377_v38 = vld [vmem:[%s896_s3 + $0xb0] sm:$0xff]  ;;  %v359_v39 = vld [vmem:[%s896_s3 + $0x20] sm:$0xff] }
  0x3f   :  { %300 = vmatpush.msrb.mxu1 %v137_v45  ;;  %267 = vmatmul.f32.vlgmr.msra.gmra.mxu3 %v188_v48  ;;  %v366_v18 = vld [vmem:[%s896_s3 + $0x58] sm:$0xff]  ;;  %v376_v40 = vld [vmem:[%s896_s3 + $0xa8] sm:$0xff]  ;;  %v375_v42 = vld [vmem:[%s896_s3 + $0xa0] sm:$0xff] }
  0x40   :  { %323 = vmatpush.msrb.mxu2 %v62_v46  ;;  %342 = vmatpush.msrb.mxu3 %v130_v47  ;;  %v460_v23 = vld [vmem:[%s898_s5 + $0xd8] sm:$0xff]  ;;  %v357_v45 = vld [vmem:[%s896_s3 + $0x10] sm:$0xff] }
  0x41   :  { %282 = vmatpush.msrb.mxu0 %v65_v49  ;;  %301 = vmatpush.msrb.mxu1 %v133_v50  ;;  %v382_v24 = vld [vmem:[%s896_s3 + $0xd8] sm:$0xff]  ;;  %v439_v47 = vld [vmem:[%s898_s5 + $0x30] sm:$0xff]  ;;  %v356_v49 = vld [vmem:[%s896_s3 + $0x8] sm:$0xff] }
  0x42   :  { %324 = vmatpush.msrb.mxu2 %v58_v51  ;;  %343 = vmatpush.msrb.mxu3 %v126_v52  ;;  %v362_v33 = vld [vmem:[%s896_s3 + $0x38] sm:$0xff]  ;;  %v373_v50 = vld [vmem:[%s896_s3 + $0x90] sm:$0xff]  ;;  %v438_v51 = vld [vmem:[%s898_s5 + $0x28] sm:$0xff] }
  0x43   :  { %207 = vmatmul.f32.vlgmr.msra.gmra.mxu0 %v187_v44  ;;  %302 = vmatpush.msrb.mxu1 %v129_v54  ;;  %v378_v36 = vld [vmem:[%s896_s3 + $0xb8] sm:$0xff]  ;;  %v455_v52 = vld [vmem:[%s898_s5 + $0xb0] sm:$0xff]  ;;  %v372_v54 = vld [vmem:[%s896_s3 + $0x88] sm:$0xff] }
  0x44   :  { %283 = vmatpush.msrb.mxu0 %v61_v53  ;;  %325 = vmatpush.msrb.mxu2 %v54_v55  ;;  %v358_v41 = vld [vmem:[%s896_s3 + $0x18] sm:$0xff]  ;;  %v355_v53 = vld [vmem:[%s896_s3] sm:$0xff] }
  0x45   :  { %344 = vmatpush.msrb.mxu3 %v122_v56  ;;  %227 = vmatmul.f32.vlgmr.msra.gmra.mxu1 %v188_v48  ;;  %v440_v43 = vld [vmem:[%s898_s5 + $0x38] sm:$0xff]  ;;  %v437_v55 = vld [vmem:[%s898_s5 + $0x20] sm:$0xff]  ;;  %v454_v56 = vld [vmem:[%s898_s5 + $0xa8] sm:$0xff] }
  0x46   :  { %284 = vmatpush.msrb.mxu0 %v57_v57  ;;  %303 = vmatpush.msrb.mxu1 %v125_v58  ;;  %v374_v46 = vld [vmem:[%s896_s3 + $0x98] sm:$0xff]  ;;  %v371_v57 = vld [vmem:[%s896_s3 + $0x80] sm:$0xff] }
  0x47   :  { %326 = vmatpush.msrb.mxu2 %v50_v59  ;;  %345 = vmatpush.msrb.mxu3 %v118_v60  ;;  %v436_v58 = vld [vmem:[%s898_s5 + $0x18] sm:$0xff]  ;;  %v453_v59 = vld [vmem:[%s898_s5 + $0xa0] sm:$0xff]  ;;  %v435_v60 = vld [vmem:[%s898_s5 + $0x10] sm:$0xff] }
  0x48   :  { %327 = vmatmul.f32.vlgmr.msrb.gmra.mxu2 %v187_v44  ;;  %285 = vmatpush.msrb.mxu0 %v53_v61  ;;  %v452_v61 = vld [vmem:[%s898_s5 + $0x98] sm:$0xff] }
  0x49   :  { %304 = vmatpush.msrb.mxu1 %v121_v62  ;;  %346 = vmatpush.msrb.mxu3 %v114_v63  ;;  %v434_v62 = vld [vmem:[%s898_s5 + $0x8] sm:$0xff]  ;;  %v451_v63 = vld [vmem:[%s898_s5 + $0x90] sm:$0xff] }
  0x4a   :  { %469 = vmatpush.msra.mxu2 %v448_v0  ;;  %347 = vmatmul.f32.vlgmr.msrb.gmra.mxu3 %v188_v48  ;;  %v433_v0 = vld [vmem:[%s898_s5] sm:$0xff] }
  0x4b   :  { %286 = vmatpush.msrb.mxu0 %v49_v1  ;;  %305 = vmatpush.msrb.mxu1 %v117_v2  ;;  %v450_v1 = vld [vmem:[%s898_s5 + $0x88] sm:$0xff]  ;;  %v449_v2 = vld [vmem:[%s898_s5 + $0x80] sm:$0xff] }
  0x4c   :  { %287 = vmatmul.f32.vlgmr.msrb.gmra.mxu0 %v187_v44  ;;  %470 = vmatpush.msra.mxu2 %v447_v4  ;;  %v457_v44 = vld [vmem:[%s898_s5 + $0xc0] sm:$0xff] }
  0x4d   :  { %391 = vmatpush.msra.mxu0 %v370_v3  ;;  %306 = vmatpush.msrb.mxu1 %v113_v5  ;;  %v175_v3 = vld [vmem:[%s895_s2] sm:$0xf] }
  0x4e   :  { %489 = vmatpush.msra.mxu3 %v464_v6  ;;  %307 = vmatmul.f32.vlgmr.msrb.gmra.mxu1 %v188_v48  ;;  %v456_v48 = vld [vmem:[%s898_s5 + $0xb8] sm:$0xff]  ;;  %v177_v4 = vperm.slane %v175_v3, 0  ;;  %v178_v5 = vperm.slane %v175_v3, 1 }
  0x4f   :  { %392 = vmatpush.msra.mxu0 %v369_v7  ;;  %411 = vmatpush.msra.mxu1 %v386_v8 }
  0x50   :  { %471 = vmatpush.msra.mxu2 %v446_v9  ;;  %490 = vmatpush.msra.mxu3 %v463_v11 }
  0x51   :  { %393 = vmatpush.msra.mxu0 %v368_v10  ;;  %412 = vmatpush.msra.mxu1 %v385_v12 }
  0x52   :  { %472 = vmatpush.msra.mxu2 %v445_v13  ;;  %491 = vmatpush.msra.mxu3 %v462_v15  ;;  %v179_v15 = vperm.slane %v175_v3, 2 }
  0x53   :  { %394 = vmatpush.msra.mxu0 %v367_v14  ;;  %413 = vmatpush.msra.mxu1 %v384_v16 }
  0x54   :  { %473 = vmatpush.msra.mxu2 %v444_v17  ;;  %492 = vmatpush.msra.mxu3 %v461_v19  ;;  %v180_v17 = vperm.slane %v175_v3, 3 }
  0x55   :  { %395 = vmatpush.msra.mxu0 %v366_v18  ;;  %414 = vmatpush.msra.mxu1 %v383_v20 }
  0x56   :  { %474 = vmatpush.msra.mxu2 %v443_v21  ;;  %493 = vmatpush.msra.mxu3 %v460_v23 }
  0x57   :  { %396 = vmatpush.msra.mxu0 %v365_v22  ;;  %415 = vmatpush.msra.mxu1 %v382_v24 }
  0x58   :  { %475 = vmatpush.msra.mxu2 %v442_v25  ;;  %494 = vmatpush.msra.mxu3 %v459_v27 }
  0x59   :  { %397 = vmatpush.msra.mxu0 %v364_v26  ;;  %416 = vmatpush.msra.mxu1 %v381_v28  ;;  %v548_v28 = vld [vmem:[%s897_s4] ss:$0 sm:$0xff]  ;;  %s632_s4 = smov [#allocation6]  }
  0x5a   :  { %476 = vmatpush.msra.mxu2 %v441_v29  ;;  %495 = vmatpush.msra.mxu3 %v458_v31  ;;  %s526_s28 = sshll.u32 %s632_s4, 4  ;;  %s527_s28 = int_to_ptr.vmem [resolvable:$true] %s526_s28 }
  0x5b   :  { %398 = vmatpush.msra.mxu0 %v363_v30  ;;  %417 = vmatpush.msra.mxu1 %v380_v32 }
  0x5c   :  { %477 = vmatpush.msra.mxu2 %v440_v43  ;;  %496 = vmatpush.msra.mxu3 %v457_v44 }
  0x5d   :  { %399 = vmatpush.msra.mxu0 %v362_v33  ;;  %418 = vmatpush.msra.mxu1 %v379_v34  ;;  %v549_v33 = vld [vmem:[%s899_s6] ss:$0 sm:$0xff] }
  0x5e   :  { %478 = vmatpush.msra.mxu2 %v439_v47  ;;  %497 = vmatpush.msra.mxu3 %v456_v48 }
  0x5f   :  { %400 = vmatpush.msra.mxu0 %v361_v35  ;;  %419 = vmatpush.msra.mxu1 %v378_v36 }
  0x60   :  { %479 = vmatpush.msra.mxu2 %v438_v51  ;;  %498 = vmatpush.msra.mxu3 %v455_v52 }
  0x61   :  { %401 = vmatpush.msra.mxu0 %v360_v37  ;;  %420 = vmatpush.msra.mxu1 %v377_v38 }
  0x62   :  { %480 = vmatpush.msra.mxu2 %v437_v55  ;;  %499 = vmatpush.msra.mxu3 %v454_v56 }
  0x63   :  { %402 = vmatpush.msra.mxu0 %v359_v39  ;;  %421 = vmatpush.msra.mxu1 %v376_v40 }
  0x64   :  { %481 = vmatpush.msra.mxu2 %v436_v58  ;;  %500 = vmatpush.msra.mxu3 %v453_v59 }
  0x65   :  { %403 = vmatpush.msra.mxu0 %v358_v41  ;;  %422 = vmatpush.msra.mxu1 %v375_v42 }
  0x66   :  { %482 = vmatpush.msra.mxu2 %v435_v60  ;;  %501 = vmatpush.msra.mxu3 %v452_v61 }
  0x67   :  { %404 = vmatpush.msra.mxu0 %v357_v45  ;;  %423 = vmatpush.msra.mxu1 %v374_v46 }
  0x68   :  { %483 = vmatpush.msra.mxu2 %v434_v62  ;;  %502 = vmatpush.msra.mxu3 %v451_v63 }
  0x69   :  { %405 = vmatpush.msra.mxu0 %v356_v49  ;;  %424 = vmatpush.msra.mxu1 %v373_v50 }
  0x6a   :  { %484 = vmatpush.msra.mxu2 %v433_v0  ;;  %503 = vmatpush.msra.mxu3 %v450_v1 }
  0x6b   :  { %406 = vmatpush.msra.mxu0 %v355_v53  ;;  %425 = vmatpush.msra.mxu1 %v372_v54 }
  0x6c   :  { %504 = vmatpush.msra.mxu3 %v449_v2 }
  0x6d   :  { %426 = vmatpush.msra.mxu1 %v371_v57 }
  0xc0   :  { %v208_v6 = vpop.f32.mrf.mxu0  ;;  %v248_v8 = vpop.f32.mrf.mxu2 }
  0xc1   :  { %v209_v7 = vadd.f32 %v208_v6, %v177_v4  ;;  %v249_v10 = vadd.f32 %v248_v8, %v178_v5 }
  0xc2   :  { %v228_v9 = vpop.f32.mrf.mxu1  ;;  %v268_v12 = vpop.f32.mrf.mxu3 }
  0xc3   :  { %v229_v11 = vadd.f32 %v228_v9, %v209_v7  ;;  %v269_v13 = vadd.f32 %v268_v12, %v249_v10 }
  0xc5   :  { %v351_v14 = vmax.f32 %v229_v11, 0.0  ;;  %v352_v16 = vmax.f32 %v269_v13, 0.0 }
  0xc7   :  { %407 = vmatmul.f32.vlgmr.msra.gmra.mxu0 %v351_v14  ;;  %427 = vmatmul.f32.vlgmr.msra.gmra.mxu1 %v352_v16 }
  0xc9   :  { %v288_v18 = vpop.f32.mrf.mxu0 }
  0xca   :  { %v289_v19 = vadd.f32 %v288_v18, %v179_v15 }
  0xcb   :  { %v328_v20 = vpop.f32.mrf.mxu2  ;;  %v308_v21 = vpop.f32.mrf.mxu1 }
  0xcc   :  { %v329_v22 = vadd.f32 %v328_v20, %v180_v17  ;;  %v309_v23 = vadd.f32 %v308_v21, %v289_v19 }
  0xcd   :  { %v348_v24 = vpop.f32.mrf.mxu3 }
  0xce   :  { %v353_v25 = vmax.f32 %v309_v23, 0.0  ;;  %v349_v26 = vadd.f32 %v348_v24, %v329_v22 }
  0xd0   :  { %v354_v27 = vmax.f32 %v349_v26, 0.0  ;;  %485 = vmatmul.f32.vlgmr.msra.gmra.mxu2 %v353_v25 }
  0xd2   :  { %505 = vmatmul.f32.vlgmr.msra.gmra.mxu3 %v354_v27 }
 0x144   :  { %v408_v29 = vpop.f32.mrf.mxu0  ;;  %v428_v31 = vpop.f32.mrf.mxu1 }
 0x145   :  { %v409_v30 = vadd.f32 %v548_v28, %v408_v29 }
 0x147   :  { %v429_v32 = vadd.f32 %v428_v31, %v409_v30 }
 0x149   :  { %432 = vst.msk [vmem:[#allocation5] sm:$0x3] %vm431_vm0, %v429_v32 }
 0x14a   :  { %520 = dma.vmem_to_hbm [thread:$0]  %s516_s22, 32, %s518_s25, [#allocation4]  }
 0x153   :  { %v486_v34 = vpop.f32.mrf.mxu2 }
 0x154   :  { %v487_v35 = vadd.f32 %v549_v33, %v486_v34 }
 0x155   :  { %v506_v36 = vpop.f32.mrf.mxu3 }
 0x156   :  { %v507_v37 = vadd.f32 %v506_v36, %v487_v35 }
 0x158   :  { %509 = vst.msk [vmem:[#allocation6] sm:$0x3] %vm431_vm0, %v507_v37 }
 0x159   :  { %531 = dma.vmem_to_hbm [thread:$0]  %s527_s28, 32, %s529_s7, [#allocation7]  }
 0x15a   :  { %624 = dma.done.wait [#allocation4], 32  }
 0x15b   :  { %625 = vsyncadd [#allocation4], 4294967264 }
 0x15c   :  { %626 = dma.done.wait [#allocation7], 32  }
 0x15d   :  { %627 = vsyncadd [#allocation7], 4294967264 }
 0x15e   :  { %540 = vsyncpa [#allocation3], 1 }
 0x15f   :  { %541 = vsyncpa [#allocation4], 1 }
 0x160   :  { %542 = vsyncpa [#allocation7], 1 }

</bundles_post_ra>
